<compile_context>
chip_gen: v7x
topology: tpu7x:2x2x1
jax: 0.10.0
libtpu: 0.0.40
codegen_flags: <defaults>
</compile_context>

<pallas_src>
import functools

import jax
import jax.numpy as jnp
from jax.experimental import pallas as pl
from jax.experimental.pallas import tpu as pltpu


def _round_up(v, m):
    return ((v + m - 1) // m) * m


def _mlp_fused_kernel(*refs, num_layers, k_pads, n_pads, mxu_dtype):
    # refs = (x, w_0, bst_0, w_1, bst_1, ..., w_{L-1}, bst_{L-1}, out, act_scratch)
    x_ref = refs[0]
    o_ref = refs[1 + 2 * num_layers]
    act_ref = refs[2 + 2 * num_layers]

    for l in range(num_layers):  # static unroll: num_layers is a small compile-time int
        w_ref = refs[1 + 2 * l]
        bst_ref = refs[2 + 2 * l]
        kp, np_ = k_pads[l], n_pads[l]

        a = x_ref[...] if l == 0 else act_ref[:, :kp]
        y = jnp.dot(a.astype(mxu_dtype), w_ref[...].astype(mxu_dtype),
                    preferred_element_type=jnp.float32)
        y = y + bst_ref[0:1, :]                            # bias
        if l < num_layers - 1:
            y = jnp.maximum(y, 0.0)                        # ReLU
            y = y * bst_ref[1:2, :] + bst_ref[2:3, :]      # folded BatchNorm1d (eval)
            act_ref[:, :np_] = y                           # stays in VMEM
        else:
            o_ref[...] = y.astype(o_ref.dtype)             # lane-dense store


def mlp_forward(x, params, *, mxu_dtype=jnp.float32):
    """Fused eval-mode MLP forward.

    params[l]: dict with 'w' (in, out) and 'b'; hidden layers also have 's', 't'
    (the folded BatchNorm scale/shift). mxu_dtype=jnp.bfloat16 recommended on v6e/v7x.
    """
    M, K0 = x.shape
    L = len(params)
    dims = [params[0]["w"].shape[0]] + [p["w"].shape[1] for p in params]
    assert dims[0] == K0
    pdims = [_round_up(d, 128) for d in dims]          # lane-dense / MXU-friendly widths
    k_pads, n_pads = tuple(pdims[:-1]), tuple(pdims[1:])
    wmax = max(pdims)

    # Row tile: whole batch (padded to sublane multiple) when small, else 256-row tiles.
    tm = _round_up(M, 8) if M <= 256 else 256
    Mp = _round_up(M, tm)

    xp = jnp.zeros((Mp, pdims[0]), x.dtype).at[:M, :K0].set(x)

    operands = [xp]
    in_specs = [pl.BlockSpec((tm, pdims[0]), lambda i: (i, 0))]
    flops = 0
    bytes_accessed = xp.size * xp.dtype.itemsize
    for l, p in enumerate(params):
        kp, np_ = k_pads[l], n_pads[l]
        w = jnp.zeros((kp, np_), jnp.float32).at[: dims[l], : dims[l + 1]].set(p["w"])
        w = w.astype(mxu_dtype)
        # Packed (bias, bn_scale, bn_shift); zero padding keeps padded lanes at 0.
        bst = jnp.zeros((3, np_), jnp.float32)
        bst = bst.at[0, : dims[l + 1]].set(p["b"])
        if l < L - 1:
            bst = bst.at[1, : dims[l + 1]].set(p["s"])
            bst = bst.at[2, : dims[l + 1]].set(p["t"])
        operands += [w, bst]
        in_specs += [
            pl.BlockSpec((kp, np_), lambda i: (0, 0)),   # weights resident across grid
            pl.BlockSpec((3, np_), lambda i: (0, 0)),    # packed bias/scale/shift
        ]
        flops += 2 * Mp * kp * np_
        bytes_accessed += w.size * w.dtype.itemsize + bst.size * bst.dtype.itemsize

    out_pad = n_pads[-1]
    bytes_accessed += Mp * out_pad * x.dtype.itemsize

    kernel = functools.partial(
        _mlp_fused_kernel,
        num_layers=L, k_pads=k_pads, n_pads=n_pads, mxu_dtype=mxu_dtype,
    )

    out_padded = pl.pallas_call(
        kernel,
        out_shape=jax.ShapeDtypeStruct((Mp, out_pad), x.dtype),
        grid_spec=pltpu.PrefetchScalarGridSpec(
            num_scalar_prefetch=0,
            grid=(Mp // tm,),
            in_specs=in_specs,
            out_specs=pl.BlockSpec((tm, out_pad), lambda i: (i, 0)),
            scratch_shapes=[pltpu.VMEM((tm, wmax), jnp.float32)],
        ),
        compiler_params=pltpu.CompilerParams(
            dimension_semantics=("parallel",),
        ),
        cost_estimate=pl.CostEstimate(
            flops=flops, transcendentals=0, bytes_accessed=bytes_accessed,
        ),
    )(*operands)

    return out_padded[:M, : dims[-1]]


def init_params(key, in_channels, hidden_channels, out_channels, num_layers):
    dims = [in_channels] + [hidden_channels] * (num_layers - 1) + [out_channels]
    params = []
    eps = 1e-5
    for li in range(num_layers):
        fan_in, fan_out = dims[li], dims[li + 1]
        key, kw, kb, kg, kbe, km, kv = jax.random.split(key, 7)
        bound = 1.0 / jnp.sqrt(jnp.float32(fan_in))
        # PyTorch Linear stores weight as (out, in); we store it transposed (in, out).
        w = jax.random.uniform(kw, (fan_in, fan_out), jnp.float32, -bound, bound)
        b = jax.random.uniform(kb, (fan_out,), jnp.float32, -bound, bound)
        p = {"w": w, "b": b}
        if li < num_layers - 1:
            gamma = 1.0 + 0.1 * jax.random.normal(kg, (fan_out,), jnp.float32)
            beta = 0.1 * jax.random.normal(kbe, (fan_out,), jnp.float32)
            running_mean = 0.1 * jax.random.normal(km, (fan_out,), jnp.float32)
            running_var = 1.0 + 0.1 * jax.random.uniform(kv, (fan_out,), jnp.float32)
            inv_std = 1.0 / jnp.sqrt(running_var + eps)
            p["s"] = gamma * inv_std
            p["t"] = beta - running_mean * p["s"]
        params.append(p)
    return params


def mlp_reference(x, params):
    """Pure-JAX reference of the same eval-mode forward."""
    n_layers = len(params)
    for li, p in enumerate(params):
        x = x @ p["w"] + p["b"]
        if li < n_layers - 1:
            x = jnp.maximum(x, 0.0)
            x = x * p["s"] + p["t"]
            # TODO(synk): dropout omitted (p=0.0 default / eval mode => identity).
    return x


if __name__ == "__main__":
    key = jax.random.PRNGKey(0)
    kx, kp = jax.random.split(key)

    batch = 16
    in_channels, hidden_channels, out_channels = 32, 64, 8
    num_layers = 3

    x = jax.random.normal(kx, (batch, in_channels), jnp.float32)
    params = init_params(kp, in_channels, hidden_channels, out_channels, num_layers)

    ref = mlp_reference(x, params)

    # f32 MXU path (exact vs reference).
    out = mlp_forward(x, params, mxu_dtype=jnp.float32)
    out = jax.block_until_ready(out)
    assert out.shape == (batch, out_channels)
    assert jnp.allclose(out, ref, atol=1e-4, rtol=1e-4), "f32 mismatch vs reference"

    # bf16 MXU path (recommended on v6e/v7x): f32 accumulation, looser tolerance.
    out_bf16 = mlp_forward(x, params, mxu_dtype=jnp.bfloat16)
    out_bf16 = jax.block_until_ready(out_bf16)
    assert jnp.all(jnp.isfinite(out_bf16))
    assert jnp.allclose(out_bf16, ref, atol=1e-1, rtol=1e-1), "bf16 mismatch vs reference"

    print("KERNEL_OK")
</pallas_src>

<mosaic_0001>
module attributes {stable_mosaic.version = 11 : i64} {
  func.func @_mlp_fused_kernel(%arg0: i32, %arg1: memref<16x128xf32, #tpu.memory_space<vmem>>, %arg2: memref<128x128xf32, #tpu.memory_space<vmem>>, %arg3: memref<3x128xf32, #tpu.memory_space<vmem>>, %arg4: memref<128x128xf32, #tpu.memory_space<vmem>>, %arg5: memref<3x128xf32, #tpu.memory_space<vmem>>, %arg6: memref<128x128xf32, #tpu.memory_space<vmem>>, %arg7: memref<3x128xf32, #tpu.memory_space<vmem>>, %arg8: memref<16x128xf32, #tpu.memory_space<vmem>>, %arg9: memref<16x128xf32, #tpu.memory_space<vmem>>) attributes {dimension_semantics = [#tpu.dimension_semantics<parallel>], iteration_bounds = array<i64: 1>, scalar_prefetch = 0 : i64, scratch_operands = 1 : i64, tpu.core_type = #tpu.core_type<tc>, window_params = [{transform_indices = @transform_0, window_bounds = array<i64: 16, 128>}, {pipeline_mode = #tpu.pipeline_mode<synchronous>, transform_indices = @transform_1, window_bounds = array<i64: 128, 128>}, {pipeline_mode = #tpu.pipeline_mode<synchronous>, transform_indices = @transform_2, window_bounds = array<i64: 3, 128>}, {pipeline_mode = #tpu.pipeline_mode<synchronous>, transform_indices = @transform_3, window_bounds = array<i64: 128, 128>}, {pipeline_mode = #tpu.pipeline_mode<synchronous>, transform_indices = @transform_4, window_bounds = array<i64: 3, 128>}, {pipeline_mode = #tpu.pipeline_mode<synchronous>, transform_indices = @transform_5, window_bounds = array<i64: 128, 128>}, {pipeline_mode = #tpu.pipeline_mode<synchronous>, transform_indices = @transform_6, window_bounds = array<i64: 3, 128>}, {transform_indices = @transform_7, window_bounds = array<i64: 16, 128>}]} {
    %c0 = arith.constant 0 : index
    %c0_0 = arith.constant 0 : index
    %0 = vector.load %arg1[%c0, %c0_0] : memref<16x128xf32, #tpu.memory_space<vmem>>, vector<16x128xf32>
    %c0_1 = arith.constant 0 : index
    %c0_2 = arith.constant 0 : index
    %1 = vector.load %arg2[%c0_1, %c0_2] : memref<128x128xf32, #tpu.memory_space<vmem>>, vector<128x128xf32>
    %cst = arith.constant dense<0.000000e+00> : vector<16x128xf32>
    %2 = tpu.matmul %0, %1, %cst {dimension_numbers = #tpu.dot_dimension_numbers<[1], [0], [0], [1], [0, 0, 1, 1], [], []>} : vector<16x128xf32>, vector<128x128xf32>, vector<16x128xf32> -> vector<16x128xf32>
    %c0_3 = arith.constant 0 : index
    %c0_4 = arith.constant 0 : index
    %3 = vector.load %arg3[%c0_3, %c0_4] : memref<3x128xf32, #tpu.memory_space<vmem>>, vector<1x128xf32>
    %4 = vector.broadcast %3 : vector<1x128xf32> to vector<16x128xf32>
    %5 = arith.addf %2, %4 : vector<16x128xf32>
    %cst_5 = arith.constant 0.000000e+00 : f32
    %6 = vector.broadcast %cst_5 : f32 to vector<16x128xf32>
    %7 = arith.maximumf %5, %6 : vector<16x128xf32>
    %c1 = arith.constant 1 : index
    %c0_6 = arith.constant 0 : index
    %8 = vector.load %arg3[%c1, %c0_6] : memref<3x128xf32, #tpu.memory_space<vmem>>, vector<1x128xf32>
    %9 = vector.broadcast %8 : vector<1x128xf32> to vector<16x128xf32>
    %10 = arith.mulf %7, %9 : vector<16x128xf32>
    %c2 = arith.constant 2 : index
    %c0_7 = arith.constant 0 : index
    %11 = vector.load %arg3[%c2, %c0_7] : memref<3x128xf32, #tpu.memory_space<vmem>>, vector<1x128xf32>
    %12 = vector.broadcast %11 : vector<1x128xf32> to vector<16x128xf32>
    %13 = arith.addf %10, %12 : vector<16x128xf32>
    %c0_8 = arith.constant 0 : index
    %c0_9 = arith.constant 0 : index
    %14 = vector.load %arg9[%c0_8, %c0_9] : memref<16x128xf32, #tpu.memory_space<vmem>>, vector<16x128xf32>
    tpu.vector_store %arg9[%c0_8, %c0_9], %13 {strides = array<i32>} : memref<16x128xf32, #tpu.memory_space<vmem>>, vector<16x128xf32>,
    %c0_10 = arith.constant 0 : index
    %c0_11 = arith.constant 0 : index
    %15 = vector.load %arg9[%c0_10, %c0_11] : memref<16x128xf32, #tpu.memory_space<vmem>>, vector<16x128xf32>
    %c0_12 = arith.constant 0 : index
    %c0_13 = arith.constant 0 : index
    %16 = vector.load %arg4[%c0_12, %c0_13] : memref<128x128xf32, #tpu.memory_space<vmem>>, vector<128x128xf32>
    %cst_14 = arith.constant dense<0.000000e+00> : vector<16x128xf32>
    %17 = tpu.matmul %15, %16, %cst_14 {dimension_numbers = #tpu.dot_dimension_numbers<[1], [0], [0], [1], [0, 0, 1, 1], [], []>} : vector<16x128xf32>, vector<128x128xf32>, vector<16x128xf32> -> vector<16x128xf32>
    %c0_15 = arith.constant 0 : index
    %c0_16 = arith.constant 0 : index
    %18 = vector.load %arg5[%c0_15, %c0_16] : memref<3x128xf32, #tpu.memory_space<vmem>>, vector<1x128xf32>
    %19 = vector.broadcast %18 : vector<1x128xf32> to vector<16x128xf32>
    %20 = arith.addf %17, %19 : vector<16x128xf32>
    %cst_17 = arith.constant 0.000000e+00 : f32
    %21 = vector.broadcast %cst_17 : f32 to vector<16x128xf32>
    %22 = arith.maximumf %20, %21 : vector<16x128xf32>
    %c1_18 = arith.constant 1 : index
    %c0_19 = arith.constant 0 : index
    %23 = vector.load %arg5[%c1_18, %c0_19] : memref<3x128xf32, #tpu.memory_space<vmem>>, vector<1x128xf32>
    %24 = vector.broadcast %23 : vector<1x128xf32> to vector<16x128xf32>
    %25 = arith.mulf %22, %24 : vector<16x128xf32>
    %c2_20 = arith.constant 2 : index
    %c0_21 = arith.constant 0 : index
    %26 = vector.load %arg5[%c2_20, %c0_21] : memref<3x128xf32, #tpu.memory_space<vmem>>, vector<1x128xf32>
    %27 = vector.broadcast %26 : vector<1x128xf32> to vector<16x128xf32>
    %28 = arith.addf %25, %27 : vector<16x128xf32>
    %c0_22 = arith.constant 0 : index
    %c0_23 = arith.constant 0 : index
    %29 = vector.load %arg9[%c0_22, %c0_23] : memref<16x128xf32, #tpu.memory_space<vmem>>, vector<16x128xf32>
    tpu.vector_store %arg9[%c0_22, %c0_23], %28 {strides = array<i32>} : memref<16x128xf32, #tpu.memory_space<vmem>>, vector<16x128xf32>,
    %c0_24 = arith.constant 0 : index
    %c0_25 = arith.constant 0 : index
    %30 = vector.load %arg9[%c0_24, %c0_25] : memref<16x128xf32, #tpu.memory_space<vmem>>, vector<16x128xf32>
    %c0_26 = arith.constant 0 : index
    %c0_27 = arith.constant 0 : index
    %31 = vector.load %arg6[%c0_26, %c0_27] : memref<128x128xf32, #tpu.memory_space<vmem>>, vector<128x128xf32>
    %cst_28 = arith.constant dense<0.000000e+00> : vector<16x128xf32>
    %32 = tpu.matmul %30, %31, %cst_28 {dimension_numbers = #tpu.dot_dimension_numbers<[1], [0], [0], [1], [0, 0, 1, 1], [], []>} : vector<16x128xf32>, vector<128x128xf32>, vector<16x128xf32> -> vector<16x128xf32>
    %c0_29 = arith.constant 0 : index
    %c0_30 = arith.constant 0 : index
    %33 = vector.load %arg7[%c0_29, %c0_30] : memref<3x128xf32, #tpu.memory_space<vmem>>, vector<1x128xf32>
    %34 = vector.broadcast %33 : vector<1x128xf32> to vector<16x128xf32>
    %35 = arith.addf %32, %34 : vector<16x128xf32>
    %c0_31 = arith.constant 0 : index
    %c0_32 = arith.constant 0 : index
    %36 = vector.load %arg8[%c0_31, %c0_32] : memref<16x128xf32, #tpu.memory_space<vmem>>, vector<16x128xf32>
    tpu.vector_store %arg8[%c0_31, %c0_32], %35 {strides = array<i32>} : memref<16x128xf32, #tpu.memory_space<vmem>>, vector<16x128xf32>,
    return
  }
  func.func @transform_0(%arg0: i32) -> (i32, i32) {
    %c0_i32 = arith.constant 0 : i32
    %c0_i32_0 = arith.constant 0 : i32
    return %arg0, %c0_i32 : i32, i32
  }
  func.func @transform_1(%arg0: i32) -> (i32, i32) {
    %c0_i32 = arith.constant 0 : i32
    %c0_i32_0 = arith.constant 0 : i32
    %c0_i32_1 = arith.constant 0 : i32
    return %c0_i32, %c0_i32_0 : i32, i32
  }
  func.func @transform_2(%arg0: i32) -> (i32, i32) {
    %c0_i32 = arith.constant 0 : i32
    %c0_i32_0 = arith.constant 0 : i32
    %c0_i32_1 = arith.constant 0 : i32
    return %c0_i32, %c0_i32_0 : i32, i32
  }
  func.func @transform_3(%arg0: i32) -> (i32, i32) {
    %c0_i32 = arith.constant 0 : i32
    %c0_i32_0 = arith.constant 0 : i32
    %c0_i32_1 = arith.constant 0 : i32
    return %c0_i32, %c0_i32_0 : i32, i32
  }
  func.func @transform_4(%arg0: i32) -> (i32, i32) {
    %c0_i32 = arith.constant 0 : i32
    %c0_i32_0 = arith.constant 0 : i32
    %c0_i32_1 = arith.constant 0 : i32
    return %c0_i32, %c0_i32_0 : i32, i32
  }
  func.func @transform_5(%arg0: i32) -> (i32, i32) {
    %c0_i32 = arith.constant 0 : i32
    %c0_i32_0 = arith.constant 0 : i32
    %c0_i32_1 = arith.constant 0 : i32
    return %c0_i32, %c0_i32_0 : i32, i32
  }
  func.func @transform_6(%arg0: i32) -> (i32, i32) {
    %c0_i32 = arith.constant 0 : i32
    %c0_i32_0 = arith.constant 0 : i32
    %c0_i32_1 = arith.constant 0 : i32
    return %c0_i32, %c0_i32_0 : i32, i32
  }
  func.func @transform_7(%arg0: i32) -> (i32, i32) {
    %c0_i32 = arith.constant 0 : i32
    %c0_i32_0 = arith.constant 0 : i32
    return %arg0, %c0_i32 : i32, i32
  }
}

</mosaic_0001>

<bundles_post_ra>
// kernel: tpu_custom_call.1
= control target key start
LH: loop header
LB: loop body
LE: loop exit
PB: predicated region body
PF: predicated region fallthrough
CT: control target
= control target key end

     0   :  { %12 = vsyncpa [#allocation4], 0  ;;  %s977_s0 = inlined_call_operand.hbm [shape: f32[16,128], index: 0, kind: input, shape index: {}]   ;;  %s978_s1 = inlined_call_operand.hbm [shape: f32[128,128], index: 1, kind: input, shape index: {}]   ;;  %s979_s2 = inlined_call_operand.vmem [shape: f32[3,128], index: 2, kind: input, shape index: {}]   ;;  %s980_s3 = inlined_call_operand.hbm [shape: f32[128,128], index: 3, kind: input, shape index: {}]   ;;  %s981_s4 = inlined_call_operand.vmem [shape: f32[3,128], index: 4, kind: input, shape index: {}]   ;;  %s982_s5 = inlined_call_operand.hbm [shape: f32[128,128], index: 5, kind: input, shape index: {}]   ;;  %s983_s6 = inlined_call_operand.vmem [shape: f32[3,128], index: 6, kind: input, shape index: {}]   ;;  %s984_s7 = inlined_call_operand.hbm [shape: f32[16,128], index: 7, kind: output, shape index: {}]  }
   0x1   :  { %13 = vsyncpa [#allocation7], 0 }
   0x2   :  { %14 = vsyncpa [#allocation10], 0 }
   0x3   :  { %15 = vsyncpa [#allocation5], 0  ;;  %s820_s24 = smov [#allocation6]   ;;  %s821_s26 = smov [#allocation3]  }
   0x4   :  { %s33_s25 = sshll.u32 %s820_s24, 4  ;;  %s21_s27 = sshll.u32 %s821_s26, 4  ;;  %s34_s25 = int_to_ptr.vmem [resolvable:$true] %s33_s25  ;;  %s867_s27 = int_to_ptr.vmem [resolvable:$true] %s21_s27 }
   0x5   :  { %s702_s30 = scalar_lea.hbm %s978_s1, 2048 }
   0x6   :  { %p703_p0 = scmp.ne.s32.totalorder %s978_s1, %s702_s30  ;;  %p706_p1 = scmp.lt.u32.totalorder %s702_s30, %s978_s1 }
   0x8   :  { %p708_p2 = pnand %p706_p1, %p703_p0 }
   0xa   :  { %711 = shalt.err (!%p708_p2)
}
   0xb   :  { %s712_s12 = scalar_lea.vmem %s34_s25, 2048  ;;  %p717_p4 = scmp.lt.s32.totalorder %s34_s25, %s34_s25 }
   0xc   :  { %p713_p3 = scmp.ne.s32.totalorder %s34_s25, %s712_s12  ;;  %p718_p5 = scmp.lt.s32.totalorder %s712_s12, %s712_s12 }
   0xe   :  { %p719_p6 = por %p718_p5, %p717_p4 }
  0x10   :  { %p720_p7 = pnand %p719_p6, %p713_p3 }
  0x12   :  { %723 = shalt.err (!%p720_p7)
}
  0x13   :  { %s822_s13 = smov 128   ;;  %s823_s14 = smov 8  }
  0x14   :  { %39 = dma.hbm_to_vmem [thread:$0]  %s978_s1, 2048, %s34_s25, [#allocation7], %s822_s13, %s822_s13, %s823_s14  }
  0x15   :  { %s724_s19 = scalar_lea.hbm %s977_s0, 256 }
  0x16   :  { %p725_p8 = scmp.ne.s32.totalorder %s977_s0, %s724_s19  ;;  %p728_p9 = scmp.lt.u32.totalorder %s724_s19, %s977_s0 }
  0x18   :  { %p730_p10 = pnand %p728_p9, %p725_p8 }
  0x1a   :  { %733 = shalt.err (!%p730_p10)
}
  0x1b   :  { %s734_s24 = scalar_lea.vmem %s867_s27, 256  ;;  %p739_p12 = scmp.lt.s32.totalorder %s867_s27, %s867_s27 }
  0x1c   :  { %p735_p11 = scmp.ne.s32.totalorder %s867_s27, %s734_s24  ;;  %p740_p13 = scmp.lt.s32.totalorder %s734_s24, %s734_s24 }
  0x1e   :  { %p741_p0 = por %p740_p13, %p739_p12 }
  0x20   :  { %p742_p1 = pnand %p741_p0, %p735_p11 }
  0x22   :  { %745 = shalt.err (!%p742_p1)
}
  0x23   :  { %27 = dma.hbm_to_vmem [thread:$0]  %s977_s0, 256, %s867_s27, [#allocation4], %s822_s13, %s822_s13, %s823_s14  }
  0x24   :  { %s824_s26 = smov [#allocation8]   ;;  %s825_s29 = smov [#allocation9]  }
  0x25   :  { %s47_s28 = sshll.u32 %s824_s26, 4  ;;  %s61_s30 = sshll.u32 %s825_s29, 4  ;;  %s48_s28 = int_to_ptr.vmem [resolvable:$true] %s47_s28  ;;  %s904_s30 = int_to_ptr.vmem [resolvable:$true] %s61_s30 }
  0x26   :  { %s746_s10 = scalar_lea.hbm %s980_s3, 2048 }
  0x27   :  { %p747_p2 = scmp.ne.s32.totalorder %s980_s3, %s746_s10  ;;  %p750_p3 = scmp.lt.u32.totalorder %s746_s10, %s980_s3 }
  0x29   :  { %p752_p4 = pnand %p750_p3, %p747_p2 }
  0x2b   :  { %755 = shalt.err (!%p752_p4)
}
  0x2c   :  { %s756_s0 = scalar_lea.vmem %s48_s28, 2048  ;;  %p761_p6 = scmp.lt.s32.totalorder %s48_s28, %s48_s28 }
  0x2d   :  { %p757_p5 = scmp.ne.s32.totalorder %s48_s28, %s756_s0  ;;  %p762_p7 = scmp.lt.s32.totalorder %s756_s0, %s756_s0 }
  0x2f   :  { %p763_p8 = por %p762_p7, %p761_p6 }
  0x31   :  { %p764_p9 = pnand %p763_p8, %p757_p5 }
  0x33   :  { %767 = shalt.err (!%p764_p9)
}
  0x34   :  { %53 = dma.hbm_to_vmem [thread:$0]  %s980_s3, 2048, %s48_s28, [#allocation7], %s822_s13, %s822_s13, %s823_s14  }
  0x35   :  { %s768_s20 = scalar_lea.hbm %s982_s5, 2048 }
  0x36   :  { %p769_p10 = scmp.ne.s32.totalorder %s982_s5, %s768_s20  ;;  %p772_p11 = scmp.lt.u32.totalorder %s768_s20, %s982_s5 }
  0x38   :  { %p774_p12 = pnand %p772_p11, %p769_p10 }
  0x3a   :  { %777 = shalt.err (!%p774_p12)
}
  0x3b   :  { %s778_s1 = scalar_lea.vmem %s904_s30, 2048  ;;  %p783_p0 = scmp.lt.s32.totalorder %s904_s30, %s904_s30 }
  0x3c   :  { %p779_p13 = scmp.ne.s32.totalorder %s904_s30, %s778_s1  ;;  %p784_p1 = scmp.lt.s32.totalorder %s778_s1, %s778_s1 }
  0x3e   :  { %p785_p2 = por %p784_p1, %p783_p0 }
  0x40   :  { %p786_p3 = pnand %p785_p2, %p779_p13 }
  0x42   :  { %789 = shalt.err (!%p786_p3)
}
  0x43   :  { %67 = dma.hbm_to_vmem [thread:$0]  %s982_s5, 2048, %s904_s30, [#allocation10], %s822_s13, %s822_s13, %s823_s14  }
  0x44   :  { %812 = dma.done.wait [#allocation4], 256  }
  0x45   :  { %813 = vsyncadd [#allocation4], 4294967040 }
  0x46   :  { %814 = dma.done.wait [#allocation7], 4096  }
  0x47   :  { %815 = vsyncadd [#allocation7], 4294963200 }
  0x48   :  { %816 = dma.done.wait [#allocation10], 2048  }
  0x49   :  { %817 = vsyncadd [#allocation10], 4294965248  ;;  %v84_v0 = vld [vmem:[#allocation6] sm:$0xff]  ;;  %v85_v1 = vld [vmem:[#allocation6 + $0x8] sm:$0xff]  ;;  %s826_s27 = smov [#allocation11]  }
  0x4a   :  { %v86_v2 = vld [vmem:[#allocation6 + $0x10] sm:$0xff]  ;;  %v599_v3 = vpack.c.bf16 %v85_v1, %v84_v0  ;;  %v87_v4 = vld [vmem:[#allocation6 + $0x18] sm:$0xff]  ;;  %v88_v6 = vld [vmem:[#allocation6 + $0x20] sm:$0xff]  ;;  %s419_s17 = sshll.u32 %s826_s27, 4  ;;  %s420_s17 = int_to_ptr.vmem [resolvable:$true] %s419_s17 }
  0x4b   :  { %v603_v5 = vpack.c.bf16 %v87_v4, %v86_v2  ;;  %v89_v7 = vld [vmem:[#allocation6 + $0x28] sm:$0xff]  ;;  %v90_v9 = vld [vmem:[#allocation6 + $0x30] sm:$0xff]  ;;  %v91_v10 = vld [vmem:[#allocation6 + $0x38] sm:$0xff]  ;;  %s790_s18 = scalar_lea.vmem %s420_s17, 256  ;;  %p795_p5 = scmp.lt.s32.totalorder %s420_s17, %s420_s17 }
  0x4c   :  { %600 = vmatprep.subr.bf16.mxu0 %v599_v3  ;;  %v607_v8 = vpack.c.bf16 %v89_v7, %v88_v6  ;;  %v82_v11 = vld [vmem:[#allocation3] sm:$0xff]  ;;  %v200_v12 = vld [vmem:[#allocation8] sm:$0xff]  ;;  %v201_v13 = vld [vmem:[#allocation8 + $0x8] sm:$0xff]  ;;  %v611_v20 = vpack.c.bf16 %v91_v10, %v90_v9  ;;  %p791_p4 = scmp.ne.s32.totalorder %s420_s17, %s790_s18  ;;  %p796_p6 = scmp.lt.s32.totalorder %s790_s18, %s790_s18 }
  0x4d   :  { %602 = vmatpush3.bf16.msra.mxu0 %v599_v3  ;;  %526 = vmatprep.mubr.f32.mxu0 %v82_v11  ;;  %v202_v14 = vld [vmem:[#allocation8 + $0x10] sm:$0xff]  ;;  %v631_v15 = vpack.c.bf16 %v201_v13, %v200_v12  ;;  %v203_v16 = vld [vmem:[#allocation8 + $0x18] sm:$0xff]  ;;  %v204_v18 = vld [vmem:[#allocation8 + $0x20] sm:$0xff] }
  0x4e   :  { %604 = vmatprep.subr.bf16.mxu0 %v603_v5  ;;  %v635_v17 = vpack.c.bf16 %v203_v16, %v202_v14  ;;  %v205_v19 = vld [vmem:[#allocation8 + $0x28] sm:$0xff]  ;;  %v92_v21 = vld [vmem:[#allocation6 + $0x40] sm:$0xff]  ;;  %v206_v24 = vld [vmem:[#allocation8 + $0x30] sm:$0xff]  ;;  %p797_p7 = por %p796_p6, %p795_p5 }
  0x4f   :  { %632 = vmatprep.subr.bf16.mxu1 %v631_v15  ;;  %v93_v22 = vld [vmem:[#allocation6 + $0x48] sm:$0xff]  ;;  %v639_v23 = vpack.c.bf16 %v205_v19, %v204_v18  ;;  %v207_v25 = vld [vmem:[#allocation8 + $0x38] sm:$0xff]  ;;  %v94_v27 = vld [vmem:[#allocation6 + $0x50] sm:$0xff] }
  0x50   :  { %634 = vmatpush3.bf16.msra.mxu1 %v631_v15  ;;  %v615_v26 = vpack.c.bf16 %v93_v22, %v92_v21  ;;  %v95_v28 = vld [vmem:[#allocation6 + $0x58] sm:$0xff]  ;;  %v643_v29 = vpack.c.bf16 %v207_v25, %v206_v24  ;;  %v208_v30 = vld [vmem:[#allocation8 + $0x40] sm:$0xff]  ;;  %v209_v31 = vld [vmem:[#allocation8 + $0x48] sm:$0xff]  ;;  %p798_p8 = pnand %p797_p7, %p791_p4 }
  0x51   :  { %606 = vmatpush3.bf16.msra.mxu0 %v603_v5  ;;  %636 = vmatprep.subr.bf16.mxu1 %v635_v17  ;;  %v619_v32 = vpack.c.bf16 %v95_v28, %v94_v27  ;;  %v96_v33 = vld [vmem:[#allocation6 + $0x60] sm:$0xff]  ;;  %v97_v34 = vld [vmem:[#allocation6 + $0x68] sm:$0xff]  ;;  %v647_v35 = vpack.c.bf16 %v209_v31, %v208_v30  ;;  %v210_v36 = vld [vmem:[#allocation8 + $0x50] sm:$0xff] }
  0x52   :  { %608 = vmatprep.subr.bf16.mxu0 %v607_v8  ;;  %v211_v37 = vld [vmem:[#allocation8 + $0x58] sm:$0xff]  ;;  %v623_v38 = vpack.c.bf16 %v97_v34, %v96_v33  ;;  %v98_v39 = vld [vmem:[#allocation6 + $0x70] sm:$0xff]  ;;  %v212_v44 = vld [vmem:[#allocation8 + $0x60] sm:$0xff] }
  0x53   :  { %v99_v40 = vld [vmem:[#allocation6 + $0x78] sm:$0xff]  ;;  %v651_v41 = vpack.c.bf16 %v211_v37, %v210_v36  ;;  %v213_v45 = vld [vmem:[#allocation8 + $0x68] sm:$0xff]  ;;  %v214_v47 = vld [vmem:[#allocation8 + $0x70] sm:$0xff] }
  0x54   :  { %638 = vmatpush3.bf16.msra.mxu1 %v635_v17  ;;  %v627_v42 = vpack.c.bf16 %v99_v40, %v98_v39  ;;  %v83_v43 = vld [vmem:[#allocation3 + $0x8] sm:$0xff]  ;;  %v655_v46 = vpack.c.bf16 %v213_v45, %v212_v44  ;;  %v316_v50 = vld [vmem:[#allocation9] sm:$0xff]  ;;  %v317_v51 = vld [vmem:[#allocation9 + $0x8] sm:$0xff] }
  0x55   :  { %610 = vmatpush3.bf16.msra.mxu0 %v607_v8  ;;  %640 = vmatprep.subr.bf16.mxu1 %v639_v23  ;;  %v215_v48 = vld [vmem:[#allocation8 + $0x78] sm:$0xff]  ;;  %v318_v52 = vld [vmem:[#allocation9 + $0x10] sm:$0xff]  ;;  %v663_v53 = vpack.c.bf16 %v317_v51, %v316_v50  ;;  %v320_v56 = vld [vmem:[#allocation9 + $0x20] sm:$0xff] }
  0x56   :  { %612 = vmatprep.subr.bf16.mxu0 %v611_v20  ;;  %v659_v49 = vpack.c.bf16 %v215_v48, %v214_v47  ;;  %v319_v54 = vld [vmem:[#allocation9 + $0x18] sm:$0xff]  ;;  %v321_v57 = vld [vmem:[#allocation9 + $0x28] sm:$0xff]  ;;  %v322_v59 = vld [vmem:[#allocation9 + $0x30] sm:$0xff] }
  0x57   :  { %v667_v55 = vpack.c.bf16 %v319_v54, %v318_v52  ;;  %v671_v58 = vpack.c.bf16 %v321_v57, %v320_v56  ;;  %v323_v60 = vld [vmem:[#allocation9 + $0x38] sm:$0xff]  ;;  %v324_v62 = vld [vmem:[#allocation9 + $0x40] sm:$0xff]  ;;  %v325_v63 = vld [vmem:[#allocation9 + $0x48] sm:$0xff] }
  0x58   :  { %642 = vmatpush3.bf16.msra.mxu1 %v639_v23  ;;  %v675_v61 = vpack.c.bf16 %v323_v60, %v322_v59  ;;  %v679_v0 = vpack.c.bf16 %v325_v63, %v324_v62  ;;  %v326_v1 = vld [vmem:[#allocation9 + $0x50] sm:$0xff]  ;;  %v327_v2 = vld [vmem:[#allocation9 + $0x58] sm:$0xff]  ;;  %v328_v17 = vld [vmem:[#allocation9 + $0x60] sm:$0xff] }
  0x59   :  { %614 = vmatpush3.bf16.msra.mxu0 %v611_v20  ;;  %644 = vmatprep.subr.bf16.mxu1 %v643_v29  ;;  %v683_v3 = vpack.c.bf16 %v327_v2, %v326_v1  ;;  %v433_v4 = vld [vmem:[%s979_s2] ss:$0 sm:$0xff]  ;;  %v434_v8 = vld [vmem:[%s979_s2 + $0x1] ss:$0 sm:$0xff]  ;;  %v435_v13 = vld [vmem:[%s979_s2 + $0x2] ss:$0 sm:$0xff] }
  0x5a   :  { %616 = vmatprep.subr.bf16.mxu0 %v615_v26  ;;  %v329_v18 = vld [vmem:[#allocation9 + $0x68] sm:$0xff]  ;;  %v330_v20 = vld [vmem:[#allocation9 + $0x70] sm:$0xff]  ;;  %v331_v21 = vld [vmem:[#allocation9 + $0x78] sm:$0xff] }
  0x5b   :  { %v687_v19 = vpack.c.bf16 %v329_v18, %v328_v17  ;;  %v691_v22 = vpack.c.bf16 %v331_v21, %v330_v20  ;;  %v436_v23 = vld [vmem:[%s981_s4] ss:$0 sm:$0xff]  ;;  %v437_v27 = vld [vmem:[%s981_s4 + $0x1] ss:$0 sm:$0xff] }
  0x5c   :  { %646 = vmatpush3.bf16.msra.mxu1 %v643_v29  ;;  %v439_v36 = vld [vmem:[%s983_s6] ss:$0 sm:$0xff] }
  0x5d   :  { %618 = vmatpush3.bf16.msra.mxu0 %v615_v26  ;;  %648 = vmatprep.subr.bf16.mxu1 %v647_v35 }
  0x5e   :  { %620 = vmatprep.subr.bf16.mxu0 %v619_v32 }
  0x60   :  { %650 = vmatpush3.bf16.msra.mxu1 %v647_v35 }
  0x61   :  { %622 = vmatpush3.bf16.msra.mxu0 %v619_v32  ;;  %652 = vmatprep.subr.bf16.mxu1 %v651_v41  ;;  %v438_v32 = vld [vmem:[%s981_s4 + $0x2] ss:$0 sm:$0xff] }
  0x62   :  { %624 = vmatprep.subr.bf16.mxu0 %v623_v38 }
  0x64   :  { %654 = vmatpush3.bf16.msra.mxu1 %v651_v41 }
  0x65   :  { %626 = vmatpush3.bf16.msra.mxu0 %v623_v38  ;;  %656 = vmatprep.subr.bf16.mxu1 %v655_v46 }
  0x66   :  { %628 = vmatprep.subr.bf16.mxu0 %v627_v42 }
  0x68   :  { %658 = vmatpush3.bf16.msra.mxu1 %v655_v46 }
  0x69   :  { %630 = vmatpush3.bf16.msra.mxu0 %v627_v42  ;;  %660 = vmatprep.subr.bf16.mxu1 %v659_v49 }
  0x6a   :  { %664 = vmatprep.subr.bf16.mxu0 %v663_v53 }
  0x6c   :  { %527 = vmatmul.mubr.f32.vlgmr.msra.gmra.mrb[0].mxu0 %v83_v43  ;;  %662 = vmatpush3.bf16.msra.mxu1 %v659_v49 }
  0x6d   :  { %666 = vmatpush3.bf16.msra.mxu0 %v663_v53 }
  0x6e   :  { %668 = vmatprep.subr.bf16.mxu0 %v667_v55 }
  0x71   :  { %670 = vmatpush3.bf16.msra.mxu0 %v667_v55 }
  0x72   :  { %672 = vmatprep.subr.bf16.mxu0 %v671_v58 }
  0x75   :  { %674 = vmatpush3.bf16.msra.mxu0 %v671_v58 }
  0x76   :  { %676 = vmatprep.subr.bf16.mxu0 %v675_v61 }
  0x79   :  { %678 = vmatpush3.bf16.msra.mxu0 %v675_v61 }
  0x7a   :  { %680 = vmatprep.subr.bf16.mxu0 %v679_v0 }
  0x7d   :  { %682 = vmatpush3.bf16.msra.mxu0 %v679_v0 }
  0x7e   :  { %684 = vmatprep.subr.bf16.mxu0 %v683_v3 }
  0x81   :  { %686 = vmatpush3.bf16.msra.mxu0 %v683_v3 }
  0x82   :  { %688 = vmatprep.subr.bf16.mxu0 %v687_v19 }
  0x85   :  { %690 = vmatpush3.bf16.msra.mxu0 %v687_v19 }
  0x86   :  { %692 = vmatprep.subr.bf16.mxu0 %v691_v22 }
  0x89   :  { %694 = vmatpush3.bf16.msra.mxu0 %v691_v22 }
 0x13f   :  { %v528_v5 = vpop.f32.mrb[0].mxu0 }
 0x140   :  { %v177_v6 = vadd.f32 %v528_v5, %v433_v4  ;;  %v171_v7 = vpop.f32.mrb[1].mxu0 }
 0x141   :  { %v172_v9 = vadd.f32 %v433_v4, %v171_v7 }
 0x142   :  { %v181_v10 = vmax.f32 %v177_v6, 0.0 }
 0x143   :  { %v180_v11 = vmax.f32 %v172_v9, 0.0 }
 0x144   :  { %v188_v12 = vmul.f32 %v434_v8, %v181_v10 }
 0x145   :  { %v187_v14 = vmul.f32 %v434_v8, %v180_v11 }
 0x146   :  { %v195_v16 = vadd.f32 %v435_v13, %v188_v12 }
 0x147   :  { %v194_v15 = vadd.f32 %v435_v13, %v187_v14 }
 0x149   :  { %561 = vmatprep.mubr.f32.mxu1 %v194_v15 }
 0x14a   :  { %562 = vmatmul.mubr.f32.vlgmr.msra.gmra.mrb[0].mxu1 %v195_v16 }
 0x21d   :  { %v563_v24 = vpop.f32.mrb[0].mxu1 }
 0x21e   :  { %v293_v25 = vadd.f32 %v563_v24, %v436_v23  ;;  %v287_v26 = vpop.f32.mrb[1].mxu1 }
 0x21f   :  { %v288_v28 = vadd.f32 %v436_v23, %v287_v26 }
 0x220   :  { %v297_v29 = vmax.f32 %v293_v25, 0.0 }
 0x221   :  { %v296_v30 = vmax.f32 %v288_v28, 0.0 }
 0x222   :  { %v304_v31 = vmul.f32 %v437_v27, %v297_v29 }
 0x223   :  { %v303_v33 = vmul.f32 %v437_v27, %v296_v30 }
 0x224   :  { %v311_v35 = vadd.f32 %v438_v32, %v304_v31 }
 0x225   :  { %v310_v34 = vadd.f32 %v438_v32, %v303_v33 }
 0x227   :  { %596 = vmatprep.mubr.f32.mxu0 %v310_v34 }
 0x228   :  { %597 = vmatmul.mubr.f32.vlgmr.msra.gmra.mrb[2].mxu0 %v311_v35 }
 0x2fb   :  { %v598_v37 = vpop.f32.mrb[2].mxu0 }
 0x2fc   :  { %v409_v38 = vadd.f32 %v598_v37, %v439_v36  ;;  %v403_v39 = vpop.f32.mrb[3].mxu0 }
 0x2fd   :  { %v404_v40 = vadd.f32 %v439_v36, %v403_v39 }
 0x2fe   :  { %413 = vst [vmem:[#allocation11 + $0x8] sm:$0xff] %v409_v38 }
 0x2ff   :  { %412 = vst [vmem:[#allocation11] sm:$0xff] %v404_v40 }
 0x300   :  { %801 = shalt.err (!%p798_p8)
}
 0x301   :  { %s802_s6 = scalar_lea.hbm %s984_s7, 256 }
 0x302   :  { %p803_p9 = scmp.ne.s32.totalorder %s984_s7, %s802_s6  ;;  %p806_p10 = scmp.lt.u32.totalorder %s802_s6, %s984_s7 }
 0x304   :  { %p808_p11 = pnand %p806_p10, %p803_p9 }
 0x306   :  { %811 = shalt.err (!%p808_p11)
}
 0x307   :  { %425 = dma.vmem_to_hbm [thread:$0]  %s420_s17, 256, %s984_s7, [#allocation5], %s822_s13, %s822_s13, %s823_s14  }
 0x308   :  { %818 = dma.done.wait [#allocation5], 256  }
 0x309   :  { %819 = vsyncadd [#allocation5], 4294967040 }
 0x30a   :  { %429 = vsyncpa [#allocation4], 1 }
 0x30b   :  { %430 = vsyncpa [#allocation7], 1 }
 0x30c   :  { %431 = vsyncpa [#allocation10], 1 }
 0x30d   :  { %432 = vsyncpa [#allocation5], 1 }

</bundles_post_ra>
